<compile_context>
chip_gen: v7x
topology: tpu7x:2x2x1
jax: 0.10.0
libtpu: 0.0.40
codegen_flags: <defaults>
</compile_context>

<pallas_src>
import jax
import jax.numpy as jnp
from jax.experimental import pallas as pl
from jax.experimental.pallas import tpu as pltpu


def _round_up(x, m):
    return ((x + m - 1) // m) * m


# ----------------------------------------------------------------------------
# Projection kernel:  out[b, tile] = x[b, tile] @ W + bias   (bias may be 0)
# Used to precompute fp = f @ W1_f + b1  and  gp = g @ W1_g once per batch.
# ----------------------------------------------------------------------------
def _proj_kernel(x_ref, w_ref, b_ref, out_ref):
    y = jnp.dot(x_ref[0], w_ref[...], preferred_element_type=jnp.float32)
    out_ref[0] = (y + b_ref[...]).astype(out_ref.dtype)


def _project(x, w, bias, out_dtype, tile):
    B, T, H = x.shape
    J = w.shape[1]
    return pl.pallas_call(
        _proj_kernel,
        out_shape=jax.ShapeDtypeStruct((B, T, J), out_dtype),
        grid_spec=pltpu.PrefetchScalarGridSpec(
            num_scalar_prefetch=0,
            grid=(B, T // tile),
            in_specs=[
                pl.BlockSpec((1, tile, H), lambda b, t: (b, t, 0)),
                pl.BlockSpec((H, J), lambda b, t: (0, 0)),
                pl.BlockSpec((1, J), lambda b, t: (0, 0)),
            ],
            out_specs=pl.BlockSpec((1, tile, J), lambda b, t: (b, t, 0)),
        ),
        compiler_params=pltpu.CompilerParams(
            dimension_semantics=("parallel", "parallel")),
    )(x, w, bias)


# ----------------------------------------------------------------------------
# Joint kernel: one (tT, tU, tK) output tile per grid step.
# fp tile already contains b1; all inputs are already in compute dtype.
# ----------------------------------------------------------------------------
def _joint_kernel(fp_ref, gp_ref, w2_ref, b2_ref, out_ref):
    fp = fp_ref[0]                                   # (tT, Jp) compute dtype
    gp = gp_ref[0]                                   # (tU, Jp) compute dtype
    tT, J = fp.shape
    tU = gp.shape[0]

    # Broadcast-add + ReLU in compute dtype (no per-step casts).
    h = jnp.maximum(fp[:, None, :] + gp[None, :, :], 0)      # (tT, tU, Jp)

    # Dropout: identity at inference time.

    # Aligned 2-D reshape (layout no-op), one MXU matmul with f32 accumulation.
    h2 = h.reshape(tT * tU, J)
    logits = jnp.dot(h2, w2_ref[...], preferred_element_type=jnp.float32)
    logits = logits + b2_ref[...]
    out_ref[0] = logits.reshape(tT, tU, -1).astype(out_ref.dtype)


def joint_forward(f, g, w1f, w1g, b1, w2, b2, *,
                  tile_t=None, tile_u=None, tile_k=None,
                  compute_dtype=jnp.bfloat16, out_dtype=jnp.float32):
    """RNN-T Joint forward.  f:(B,T,He) g:(B,U,Hp) -> logits (B,T,U,K)."""
    B, T, He = f.shape
    _, U, Hp = g.shape
    J = w1f.shape[1]
    K = w2.shape[1]
    cd = jnp.dtype(compute_dtype)
    od = jnp.dtype(out_dtype)
    cdb = cd.itemsize
    ob = od.itemsize

    # Sublane alignment: 16-row packing for 16-bit dtypes, 8 for f32.
    align_t = 16 if cdb == 2 else 8
    align_u = 16 if (cdb == 2 or ob == 2) else 8

    # ---- Tile selection (v7x-safe defaults; overridable) --------------------
    tT = tile_t if tile_t is not None else 128
    tU = tile_u if tile_u is not None else 16
    tK = tile_k if tile_k is not None else 256
    tT = min(_round_up(tT, align_t), _round_up(T, align_t))
    tU = min(_round_up(tU, align_u), _round_up(U, align_u))
    tK = min(_round_up(tK, 128), _round_up(K, 128))
    Jp = _round_up(J, 128)

    # ---- Generation-aware VMEM budget ---------------------------------------
    try:
        phys_vmem = int(pltpu.get_tpu_info().vmem_capacity_bytes)
    except Exception:
        phys_vmem = 64 << 20        # conservative: v7x per-core VMEM
    budget = int(phys_vmem * 0.85)

    def _est(tT_, tU_, tK_):
        return (2 * (tT_ * Jp * cdb            # fp block (double-buffered)
                     + tU_ * Jp * cdb          # gp block
                     + Jp * tK_ * cdb          # w2 block
                     + tK_ * 4                 # b2 block
                     + tT_ * tU_ * tK_ * ob)   # output block
                + tT_ * tU_ * Jp * cdb         # h temporary
                + tT_ * tU_ * tK_ * 4          # f32 logits temporary
                + (4 << 20))                   # headroom

    # Shrink tiles until the estimate fits the per-core VMEM budget.
    while _est(tT, tU, tK) > budget:
        if tK > 128:
            tK = max(128, (tK // 2 // 128) * 128)
        elif tU > align_u:
            tU = max(align_u, (tU // 2 // align_u) * align_u)
        elif tT > align_t:
            tT = max(align_t, (tT // 2 // align_t) * align_t)
        else:
            break
    vmem_limit = int(min(max(_est(tT, tU, tK), 32 << 20), budget))

    # ---- Pad every axis up to a tile multiple (numerically exact) -----------
    Tp = _round_up(T, tT)
    Up = _round_up(U, tU)
    Kp = _round_up(K, tK)

    f_p = jnp.pad(f, ((0, 0), (0, Tp - T), (0, 0))) if Tp != T else f
    g_p = jnp.pad(g, ((0, 0), (0, Up - U), (0, 0))) if Up != U else g
    w1f_p = jnp.pad(w1f, ((0, 0), (0, Jp - J))) if Jp != J else w1f
    w1g_p = jnp.pad(w1g, ((0, 0), (0, Jp - J))) if Jp != J else w1g
    b1_p = jnp.pad(b1, ((0, 0), (0, Jp - J))) if Jp != J else b1
    if Jp != J or Kp != K:
        w2_p = jnp.pad(w2, ((0, Jp - J), (0, Kp - K)))
    else:
        w2_p = w2
    b2_p = jnp.pad(b2, ((0, 0), (0, Kp - K))) if Kp != K else b2

    # ---- Hoisted first-layer projections in compute dtype (b1 folded) -------
    fp = _project(f_p.astype(cd), w1f_p.astype(cd),
                  b1_p.astype(jnp.float32), cd, tT)            # (B, Tp, Jp)
    gp = _project(g_p.astype(cd), w1g_p.astype(cd),
                  jnp.zeros((1, Jp), jnp.float32), cd, tU)     # (B, Up, Jp)

    w2c = w2_p.astype(cd)
    b2f = b2_p.astype(jnp.float32)

    # K as the second grid axis: W2/b2 block indices only change B*(Kp/tK)
    # times, so they stay resident in VMEM across the whole (T, U) sweep.
    grid = (B, Kp // tK, Tp // tT, Up // tU)

    cost = pl.CostEstimate(
        flops=2 * B * Tp * Up * Jp * Kp + 3 * B * Tp * Up * Jp,
        transcendentals=0,
        bytes_accessed=(B * Tp * Up * Kp * ob
                        + B * Tp * Jp * cdb * (Kp // tK)
                        + B * Up * Jp * cdb * (Kp // tK) * (Tp // tT)
                        + Jp * Kp * cdb + Kp * 4),
    )

    out = pl.pallas_call(
        _joint_kernel,
        out_shape=jax.ShapeDtypeStruct((B, Tp, Up, Kp), od),
        grid_spec=pltpu.PrefetchScalarGridSpec(
            num_scalar_prefetch=0,
            grid=grid,
            in_specs=[
                pl.BlockSpec((1, tT, Jp), lambda b, k, t, u: (b, t, 0)),
                pl.BlockSpec((1, tU, Jp), lambda b, k, t, u: (b, u, 0)),
                pl.BlockSpec((Jp, tK), lambda b, k, t, u: (0, k)),
                pl.BlockSpec((1, tK), lambda b, k, t, u: (0, k)),
            ],
            out_specs=pl.BlockSpec((1, tT, tU, tK),
                                   lambda b, k, t, u: (b, t, u, k)),
        ),
        compiler_params=pltpu.CompilerParams(
            dimension_semantics=("parallel", "parallel", "parallel", "parallel"),
            vmem_limit_bytes=vmem_limit,
        ),
        cost_estimate=cost,
    )(fp, gp, w2c, b2f)

    if (Tp, Up, Kp) != (T, U, K):
        out = out[:, :T, :U, :K]
    return out


def joint_reference(f, g, w1f, w1g, b1, w2, b2):
    """Pure-JAX reference mirroring the PyTorch forward (expand + cat + MLP)."""
    B, T, He = f.shape
    _, U, Hp = g.shape
    f_e = jnp.broadcast_to(f[:, :, None, :], (B, T, U, He))
    g_e = jnp.broadcast_to(g[:, None, :, :], (B, T, U, Hp))
    inp = jnp.concatenate([f_e, g_e], axis=-1)           # (B,T,U,He+Hp)
    w1 = jnp.concatenate([w1f, w1g], axis=0)             # (He+Hp, J)
    h = jnp.maximum(inp @ w1 + b1[0], 0.0)
    return h @ w2 + b2[0]


def _make_params(key, He, Hp, J, K):
    k1, k2, k3, k4, k5 = jax.random.split(key, 5)
    scale1 = 1.0 / jnp.sqrt(He + Hp)
    w1f = jax.random.uniform(k1, (He, J), jnp.float32, -scale1, scale1)
    w1g = jax.random.uniform(k2, (Hp, J), jnp.float32, -scale1, scale1)
    b1 = jax.random.uniform(k3, (1, J), jnp.float32, -scale1, scale1)
    scale2 = 1.0 / jnp.sqrt(J)
    w2 = jax.random.uniform(k4, (J, K), jnp.float32, -scale2, scale2)
    b2 = jax.random.uniform(k5, (1, K), jnp.float32, -scale2, scale2)
    return w1f, w1g, b1, w2, b2


if __name__ == "__main__":
    key = jax.random.PRNGKey(0)

    # ---- Test 1: toy config matching the module defaults, f32 everywhere ----
    #   vocab_size (K)=128, pred_n_hidden=16, enc_n_hidden=32, joint_n_hidden=64
    B, T, U = 2, 8, 9                     # U = U_labels + 1
    He, Hp, J, K = 32, 16, 64, 128
    kf, kg, kp = jax.random.split(key, 3)
    f = jax.random.normal(kf, (B, T, He), dtype=jnp.float32)
    g = jax.random.normal(kg, (B, U, Hp), dtype=jnp.float32)
    w1f, w1g, b1, w2, b2 = _make_params(kp, He, Hp, J, K)

    out = jax.block_until_ready(
        joint_forward(f, g, w1f, w1g, b1, w2, b2,
                      compute_dtype=jnp.float32, out_dtype=jnp.float32))
    ref = joint_reference(f, g, w1f, w1g, b1, w2, b2)
    assert out.shape == (B, T, U, K), out.shape
    assert jnp.allclose(out, ref, atol=1e-3, rtol=1e-3), "toy f32 mismatch"

    # ---- Test 2: awkward (unaligned) shapes exercising T/U/J/K padding ------
    B2, T2, U2 = 2, 30, 9
    He2, Hp2, J2, K2 = 48, 24, 200, 500
    kf2, kg2, kp2 = jax.random.split(jax.random.PRNGKey(1), 3)
    f2 = jax.random.normal(kf2, (B2, T2, He2), dtype=jnp.float32)
    g2 = jax.random.normal(kg2, (B2, U2, Hp2), dtype=jnp.float32)
    p2 = _make_params(kp2, He2, Hp2, J2, K2)

    out2 = jax.block_until_ready(
        joint_forward(f2, g2, *p2, tile_t=16, tile_u=8, tile_k=256,
                      compute_dtype=jnp.float32, out_dtype=jnp.float32))
    ref2 = joint_reference(f2, g2, *p2)
    assert out2.shape == (B2, T2, U2, K2), out2.shape
    assert jnp.allclose(out2, ref2, atol=1e-3, rtol=1e-3), "padded f32 mismatch"

    # ---- Test 3: default (bf16 compute) path, f32 output ---------------------
    out3 = jax.block_until_ready(joint_forward(f2, g2, *p2))
    assert out3.shape == (B2, T2, U2, K2), out3.shape
    assert jnp.allclose(out3, ref2, atol=5e-2, rtol=5e-2), "bf16-compute mismatch"

    # ---- Test 4: bf16 compute + bf16 output (halves HBM writeback) ----------
    out4 = jax.block_until_ready(
        joint_forward(f2, g2, *p2, compute_dtype=jnp.bfloat16,
                      out_dtype=jnp.bfloat16))
    assert out4.shape == (B2, T2, U2, K2), out4.shape
    assert jnp.allclose(out4.astype(jnp.float32), ref2, atol=7.5e-2,
                        rtol=7.5e-2), "bf16-out mismatch"

    print("KERNEL_OK")
</pallas_src>

<mosaic_0001>
module attributes {stable_mosaic.version = 11 : i64} {
  func.func @_proj_kernel(%arg0: i32, %arg1: i32, %arg2: memref<1x8x32xf32, #tpu.memory_space<vmem>>, %arg3: memref<32x128xf32, #tpu.memory_space<vmem>>, %arg4: memref<1x128xf32, #tpu.memory_space<vmem>>, %arg5: memref<1x8x128xf32, #tpu.memory_space<vmem>>) attributes {dimension_semantics = [#tpu.dimension_semantics<parallel>, #tpu.dimension_semantics<parallel>], iteration_bounds = array<i64: 2, 1>, scalar_prefetch = 0 : i64, scratch_operands = 0 : i64, tpu.core_type = #tpu.core_type<tc>, window_params = [{transform_indices = @transform_0, window_bounds = array<i64: 1, 8, 32>}, {pipeline_mode = #tpu.pipeline_mode<synchronous>, transform_indices = @transform_1, window_bounds = array<i64: 32, 128>}, {pipeline_mode = #tpu.pipeline_mode<synchronous>, transform_indices = @transform_2, window_bounds = array<i64: 1, 128>}, {transform_indices = @transform_3, window_bounds = array<i64: 1, 8, 128>}]} {
    %c0 = arith.constant 0 : index
    %c0_0 = arith.constant 0 : index
    %c0_1 = arith.constant 0 : index
    %0 = vector.load %arg2[%c0, %c0_0, %c0_1] : memref<1x8x32xf32, #tpu.memory_space<vmem>>, vector<1x8x32xf32>
    %1 = vector.shape_cast %0 : vector<1x8x32xf32> to vector<8x32xf32>
    %c0_2 = arith.constant 0 : index
    %c0_3 = arith.constant 0 : index
    %2 = vector.load %arg3[%c0_2, %c0_3] : memref<32x128xf32, #tpu.memory_space<vmem>>, vector<32x128xf32>
    %cst = arith.constant dense<0.000000e+00> : vector<8x128xf32>
    %3 = tpu.matmul %1, %2, %cst {dimension_numbers = #tpu.dot_dimension_numbers<[1], [0], [0], [1], [0, 0, 1, 1], [], []>} : vector<8x32xf32>, vector<32x128xf32>, vector<8x128xf32> -> vector<8x128xf32>
    %c0_4 = arith.constant 0 : index
    %c0_5 = arith.constant 0 : index
    %4 = vector.load %arg4[%c0_4, %c0_5] : memref<1x128xf32, #tpu.memory_space<vmem>>, vector<1x128xf32>
    %5 = vector.broadcast %4 : vector<1x128xf32> to vector<8x128xf32>
    %6 = arith.addf %3, %5 : vector<8x128xf32>
    %c0_6 = arith.constant 0 : index
    %c0_7 = arith.constant 0 : index
    %c0_8 = arith.constant 0 : index
    %7 = vector.load %arg5[%c0_6, %c0_7, %c0_8] : memref<1x8x128xf32, #tpu.memory_space<vmem>>, vector<1x8x128xf32>
    %8 = vector.shape_cast %7 : vector<1x8x128xf32> to vector<8x128xf32>
    %9 = vector.shape_cast %6 : vector<8x128xf32> to vector<1x8x128xf32>
    tpu.vector_store %arg5[%c0_6, %c0_7, %c0_8], %9 {strides = array<i32>} : memref<1x8x128xf32, #tpu.memory_space<vmem>>, vector<1x8x128xf32>,
    return
  }
  func.func @transform_0(%arg0: i32, %arg1: i32) -> (i32, i32, i32) {
    %c0_i32 = arith.constant 0 : i32
    %c0_i32_0 = arith.constant 0 : i32
    return %arg0, %arg1, %c0_i32 : i32, i32, i32
  }
  func.func @transform_1(%arg0: i32, %arg1: i32) -> (i32, i32) {
    %c0_i32 = arith.constant 0 : i32
    %c0_i32_0 = arith.constant 0 : i32
    %c0_i32_1 = arith.constant 0 : i32
    return %c0_i32, %c0_i32_0 : i32, i32
  }
  func.func @transform_2(%arg0: i32, %arg1: i32) -> (i32, i32) {
    %c0_i32 = arith.constant 0 : i32
    %c0_i32_0 = arith.constant 0 : i32
    %c0_i32_1 = arith.constant 0 : i32
    return %c0_i32, %c0_i32_0 : i32, i32
  }
  func.func @transform_3(%arg0: i32, %arg1: i32) -> (i32, i32, i32) {
    %c0_i32 = arith.constant 0 : i32
    %c0_i32_0 = arith.constant 0 : i32
    return %arg0, %arg1, %c0_i32 : i32, i32, i32
  }
}

</mosaic_0001>

<bundles_post_ra>
// kernel: tpu_custom_call.1
= control target key start
LH: loop header
LB: loop body
LE: loop exit
PB: predicated region body
PF: predicated region fallthrough
CT: control target
= control target key end

     0   :  { %8 = vsyncpa [#allocation3], 0  ;;  %s918_s0 = inlined_call_operand.hbm [shape: f32[2,8,32], index: 0, kind: input, shape index: {}]   ;;  %s919_s1 = inlined_call_operand.hbm [shape: f32[32,128], index: 1, kind: input, shape index: {}]   ;;  %s920_s2 = inlined_call_operand.vmem [shape: f32[1,128], index: 2, kind: input, shape index: {}]   ;;  %s921_s3 = inlined_call_operand.hbm [shape: f32[2,8,128], index: 3, kind: output, shape index: {}]  }
   0x1   :  { %10 = vsyncpa [#allocation3 + $0x1], 0 }
   0x2   :  { %11 = vsyncpa [#allocation6], 0 }
   0x3   :  { %12 = vsyncpa [#allocation4], 0 }
   0x4   :  { %14 = vsyncpa [#allocation4 + $0x1], 0  ;;  %s701_s12 = smov 0   ;;  %s703_s13 = smov 0  }
   0x5   :  { %s705_s14 = smov 0   ;;  %s707_s15 = smov 0  }
   0x6   :  { %s709_s16 = smov 0   ;;  %s711_s17 = smov 0  }
   0x7 LB: > { %s410_s18 = sadd.s32 4294967295, %s671_s17   ;;  %s411_s19 = sadd.s32 4294967294, %s671_s17   ;;  %s671_s17 = sphi %s711_s17, %s20_s17   ;;  %s667_s16 = sphi %s709_s16, %s945_s16   ;;  %s663_s15 = sphi %s707_s15, %s944_s15   ;;  %s659_s14 = sphi %s705_s14, %s943_s14   ;;  %s655_s13 = sphi %s703_s13, %s942_s13   ;;  %s651_s12 = sphi %s701_s12, %s941_s12  }
   0x8   : > { %p54_p0 = scmp.ne.s32.totalorder %s655_s13, %s651_s12  ;;  %p735_p1 = scmp.eq.s32.totalorder %s410_s18, 0 }
   0x9   : > { %p739_p2 = scmp.eq.s32.totalorder %s410_s18, 1  ;;  %p128_p3 = scmp.eq.s32.totalorder %s411_s19, 1 }
   0xa   : > { %s926_s20 = scalar_select %p735_p1, 1, 0 }
   0xb   : > { %s927_s21 = scalar_select %p739_p2, 1, 0 }
   0xc   : > { %p745_p4 = por %p735_p1, %p54_p0  ;;  %p412_p5 = scmp.ge.s32.totalorder %s671_s17, 1 }
   0xd   : > { %p750_p6 = por %p128_p3, %p54_p0  ;;  %p135_p7 = scmp.lt.s32.totalorder %s671_s17, 3 }
   0xe   : > { %s928_s22 = scalar_select %p745_p4, 1, 0 }
   0xf   : > { %s929_s23 = scalar_select %p750_p6, 1, 0 }
  0x10   : > { %p755_p8 = pnand %p412_p5, %p135_p7  ;;  %s673_s25 = smov [#allocation5]  }
  0x11   : > { %s147_s26 = sshll.u32 %s673_s25, 4  ;;  %s32_s28 = sadd.s32 1, %s667_s16  ;;  %s148_s26 = int_to_ptr.vmem [resolvable:$true] %s147_s26 }
  0x12   : > { %s930_s24 = scalar_select %p755_p8, 1, 0 }
  0x13   : > { %p457_p9 = pneg %p755_p8  ;;  %s527_s4 = scalar_lea.hbm %s919_s1, 512 }
  0x14   : > { %p528_p12 = scmp.ne.s32.totalorder %s919_s1, %s527_s4  ;;  %p534_p5 = scmp.lt.u32.totalorder %s527_s4, %s919_s1 }
  0x15   : > { %p764_p11 = pnand %p457_p9, %p735_p1 }
  0x17   : > { %p529_p13 = pneg %p764_p11 }
  0x19   : > { %p530_p0 = pnand %p529_p13, %p528_p12 }
  0x1b   : > { %p531_p3 = pneg %p530_p0 }
  0x1d   : > { %p536_p7 = pnand %p534_p5, %p531_p3 }
  0x1f   : > { %539 = shalt.err (!%p536_p7)
}
  0x20   : > { %s540_s9 = scalar_lea.vmem %s148_s26, 512  ;;  %p548_p1 = scmp.lt.s32.totalorder %s148_s26, %s148_s26 }
  0x21   : > { %p541_p9 = scmp.ne.s32.totalorder %s148_s26, %s540_s9  ;;  %p549_p4 = scmp.lt.s32.totalorder %s540_s9, %s540_s9 }
  0x23   : > { %p543_p10 = pnand %p541_p9, %p529_p13  ;;  %p550_p8 = por %p549_p4, %p548_p1 }
  0x25   : > { %p544_p6 = pneg %p543_p10 }
  0x27   : > { %p551_p2 = pnand %p550_p8, %p544_p6 }
  0x29   : > { %554 = shalt.err (!%p551_p2)
}
  0x2a   : > { %s674_s10 = smov 128   ;;  %s675_s11 = smov 8  }
  0x2b   : > { %460 = dma.hbm_to_vmem [thread:$0]  (!%p764_p11), %s919_s1, 512, %s148_s26, [#allocation6], %s674_s10, %s674_s10, %s675_s11  }
  0x2c   : > { %p34_p1 = scmp.ge.s32.totalorder %s32_s28, 2  ;;  %s41_s25 = sadd.s32 1, %s659_s14 }
  0x2d   : > { %p48_p2 = scmp.ne.s32.totalorder %s659_s14, %s655_s13  ;;  %p49_p4 = scmp.eq.s32.totalorder %s671_s17, 0 }
  0x2e   : > { %s947_s28 = smov (%p34_p1, %s32_s28), 0  ;;  %p933_p8 = scmp.ne.s32.totalorder %s927_s21, 0 }
  0x2f   : > { %p791_p6 = por %p49_p4, %p48_p2  ;;  %s36_s27 = ssub.s32 %s667_s16, %s947_s28 }
  0x30   : > { %p797_p10 = por %p933_p8, %p48_p2  ;;  %p470_p12 = scmp.lt.s32.totalorder %s671_s17, 2 }
  0x31   : > { %p39_p11 = scmp.eq.s32.totalorder %s36_s27, 0  ;;  %s164_s26 = sand.u32 1, %s659_s14  }
  0x32   : > { %s415_s4 = sshll.u32 %s164_s26, 3  ;;  %s416_s6 = sshll.u32 %s667_s16, 7 }
  0x33   : > { %s806_s5 = scalar_select %p39_p11, %s659_s14, %s41_s25  }
  0x34   : > { %s812_s9 = scalar_lea.hbm %s918_s0, %s416_s6  ;;  %s168_s21 = scalar_lea.vmem [#allocation2], %s415_s4 }
  0x35   : > { %s176_s10 = sshll.u32 %s168_s21, 4  ;;  %p818_p13 = pnand %p470_p12, %p791_p6  ;;  %s814_s10 = int_to_ptr.vmem [resolvable:$true] %s176_s10 }
  0x36   : > { %s165_s18 = scalar_lea.sflag [#allocation3], %s164_s26  ;;  %s555_s19 = scalar_lea.hbm %s812_s9, 128 }
  0x37   : > { %p556_p0 = scmp.ne.s32.totalorder %s812_s9, %s555_s19  ;;  %p557_p3 = pneg %p818_p13 }
  0x38   : > { %s560_s4 = scalar_lea.hbm %s918_s0, 256  ;;  %p561_p9 = scmp.lt.u32.totalorder %s812_s9, %s918_s0 }
  0x39   : > { %p558_p5 = pnand %p557_p3, %p556_p0  ;;  %p562_p1 = scmp.lt.u32.totalorder %s560_s4, %s555_s19 }
  0x3a   : > { %p564_p4 = scmp.lt.u32.totalorder %s555_s19, %s812_s9 }
  0x3b   : > { %p559_p7 = pneg %p558_p5  ;;  %p563_p2 = por %p562_p1, %p561_p9 }
  0x3d   : > { %p565_p6 = por %p564_p4, %p563_p2 }
  0x3f   : > { %p566_p8 = pnand %p565_p6, %p559_p7 }
  0x41   : > { %569 = shalt.err (!%p566_p8)
}
  0x42   : > { %s570_s26 = scalar_lea.vmem %s814_s10, 128  ;;  %s676_s7 = smov [#allocation2]  }
  0x43   : > { %p571_p12 = scmp.ne.s32.totalorder %s814_s10, %s570_s26  ;;  %s575_s8 = sshll.u32 %s676_s7, 4  ;;  %s576_s8 = int_to_ptr.vmem [resolvable:$false] %s575_s8 }
  0x44   : > { %s577_s21 = scalar_lea.vmem %s576_s8, 256  ;;  %p578_p5 = scmp.lt.s32.totalorder %s814_s10, %s576_s8 }
  0x45   : > { %p573_p11 = pnand %p571_p12, %p557_p3  ;;  %p579_p9 = scmp.lt.s32.totalorder %s577_s21, %s570_s26 }
  0x47   : > { %p574_p0 = pneg %p573_p11  ;;  %p580_p1 = por %p579_p9, %p578_p5 }
  0x49   : > { %p581_p2 = pnand %p580_p1, %p574_p0 }
  0x4b   : > { %584 = shalt.err (!%p581_p2)
}
  0x4c   : > { %464 = dma.hbm_to_vmem [thread:$0]  (!%p818_p13), %s812_s9, 128, %s814_s10, %s165_s18  }
  0x4d   : > { %p936_p7 = scmp.ne.s32.totalorder %s930_s24, 0 }
  0x4e   : > { %s850_s19 = sand.u32 (!%p936_p7), 1, %s655_s13   ;;  %p937_p3 = scmp.ne.s32.totalorder (!%p936_p7), %s928_s22, 0 }
  0x4f   : > { %185 = sbr.rel (%p936_p7) target bundleno = 329 (0x149), region = 32  ;;  %s418_s25 = sshll.u32 (!%p936_p7), %s850_s19, 3 }
  0x50   : > { %s188_s27 = scalar_lea.sflag (!%p936_p7), [#allocation3], %s850_s19  ;;  %s191_s4 = scalar_lea.vmem (!%p936_p7), [#allocation2], %s418_s25 }
  0x56   : > { %638 = dma.done.wait (%p937_p3), %s188_s27, 128  }
  0x57   : > { %640 = vsyncadd (%p937_p3), %s188_s27, 4294967168  ;;  %p938_p4 = scmp.ne.s32.totalorder %s926_s20, 0 }
  0x59   : > { %642 = dma.done.wait (%p938_p4), [#allocation6], 512  }
  0x5a   : > { %644 = vsyncadd (%p938_p4), [#allocation6], 4294966784  ;;  %v677_v0 = vmov 0.0|0.0   ;;  %vm678_vm0 = vmmov 0   ;;  %v679_v1 = vmov 0.0   ;;  %v219_v2 = vld [vmem:[#allocation5] sm:$0xff] }
  0x5b   : > { %443 = vmatprep.subr.bf16.mxu0 %v677_v0  ;;  %440 = vmatprep.mubr.msk.f32.mxu0 %vm678_vm0, %v679_v1  ;;  %v220_v3 = vld [vmem:[#allocation5 + $0x8] sm:$0xff]  ;;  %v221_v4 = vld [vmem:[#allocation5 + $0x10] sm:$0xff]  ;;  %v222_v6 = vld [vmem:[#allocation5 + $0x18] sm:$0xff]  ;;  %vm230_vm1 = vcmask 261120   ;;  %s424_s24 = sshll.u32 %s663_s15, 7  ;;  %s217_s9 = scalar_lea.vmem [#allocation7], %s418_s25 }
  0x5c   : > { %v444_v5 = vpack.c.bf16 %v220_v3, %v219_v2  ;;  %v447_v7 = vpack.c.bf16 %v222_v6, %v221_v4  ;;  %v218_v8 = vld [vmem:[%s191_s4] sm:$0xff]  ;;  %s320_s10 = sshll.u32 %s217_s9, 4  ;;  %s869_s29 = scalar_lea.hbm %s921_s3, %s424_s24  ;;  %s871_s10 = int_to_ptr.vmem [resolvable:$true] %s320_s10 }
  0x5d   : > { %v421_v9 = vld [vmem:[%s920_s2] ss:$0 sm:$0xff]  ;;  %s306_s6 = scalar_lea.sflag [#allocation4], %s850_s19  ;;  %s585_s26 = scalar_lea.vmem %s871_s10, 128 }
  0x5e   : > { %445 = vmatpush3.bf16.msra.mxu0 %v444_v5  ;;  %p586_p13 = scmp.ne.s32.totalorder %s871_s10, %s585_s26  ;;  %s680_s15 = smov [#allocation7]  }
  0x5f   : > { %446 = vmatprep.subr.bf16.mxu0 %v677_v0  ;;  %s589_s7 = sshll.u32 %s680_s15, 4  ;;  %s590_s7 = int_to_ptr.vmem [resolvable:$false] %s589_s7 }
  0x60   : > { %p587_p6 = pnand %p586_p13, %p797_p10  ;;  %s591_s8 = scalar_lea.vmem %s590_s7, 256 }
  0x61   : > { %p592_p12 = scmp.lt.s32.totalorder %s871_s10, %s590_s7  ;;  %p593_p11 = scmp.lt.s32.totalorder %s591_s8, %s585_s26 }
  0x62   : > { %448 = vmatpush3.bf16.msra.mxu0 %v447_v7  ;;  %p588_p8 = pneg %p587_p6 }
  0x63   : > { %p594_p0 = por %p593_p11, %p592_p12 }
  0x65   : > { %441 = vmatmul.mubr.msk.f32.vlgmr.msra.gmra.mrb[0].mxu0 %vm230_vm1, %v218_v8  ;;  %p595_p5 = pnand %p594_p0, %p588_p8 }
 0x138   : > { %v300_v10 = vpop.f32.mrb[0].mxu0 }
 0x139   : > { %v301_v11 = vadd.f32 %v421_v9, %v300_v10  ;;  %v442_v12 = vpop.f32.mrb[1].mxu0 }
 0x13b   : > { %304 = vst [vmem:[%s217_s9] sm:$0xff] %v301_v11 }
 0x13c   : > { %598 = shalt.err (!%p595_p5)
}
 0x13d   : > { %s599_s21 = scalar_lea.hbm %s869_s29, 128  ;;  %s603_s27 = scalar_lea.hbm %s921_s3, 256 }
 0x13e   : > { %p600_p9 = scmp.ne.s32.totalorder %s869_s29, %s599_s21  ;;  %p604_p7 = scmp.lt.u32.totalorder %s869_s29, %s921_s3 }
 0x13f   : > { %p605_p3 = scmp.lt.u32.totalorder %s603_s27, %s599_s21  ;;  %p607_p13 = scmp.lt.u32.totalorder %s599_s21, %s869_s29 }
 0x140   : > { %p601_p1 = pnand %p600_p9, %p797_p10 }
 0x141   : > { %p606_p4 = por %p605_p3, %p604_p7 }
 0x142   : > { %p602_p2 = pneg %p601_p1 }
 0x143   : > { %p608_p6 = por %p607_p13, %p606_p4 }
 0x145   : > { %p609_p8 = pnand %p608_p6, %p602_p2 }
 0x147   : > { %612 = shalt.err (!%p609_p8)
}
 0x148   : > { %455 = dma.vmem_to_hbm [thread:$0]  (%p797_p10), %s871_s10, 128, %s869_s29, %s306_s6  }
 0x149 PF: > { %s332_s22 = sand.u32 1, %s651_s12   ;;  %p939_p12 = scmp.ne.s32.totalorder %s929_s23, 0 }
 0x14a   : > { %p940_p11 = scmp.ge.s32.totalorder %s671_s17, 2  ;;  %s333_s24 = scalar_lea.sflag [#allocation4], %s332_s22 }
 0x14c   : > { %p466_p0 = pnand %p940_p11, %p939_p12 }
 0x14e   : > { %646 = dma.done.wait (!%p466_p0), %s333_s24, 128  }
 0x14f   : > { %648 = vsyncadd (!%p466_p0), %s333_s24, 4294967168  ;;  %s20_s17 = sadd.s32 1, %s671_s17   ;;  %s941_s12 = smov %s655_s13 }
 0x150   : > { %p17_p5 = scmp.ge.s32.totalorder %s20_s17, 4   ;;  %s942_s13 = smov %s659_s14 }
 0x151   : > { %s943_s14 = smov %s806_s5  ;;  %s944_s15 = smov %s667_s16 }
 0x152   : > { %s945_s16 = smov %s947_s28  ;;  %19 = sbr.rel (!%p17_p5) target bundleno = 7 (0x7), region = 81 }
 0x159   :  { %338 = vsyncpa [#allocation3], 1 }
 0x15a   :  { %340 = vsyncpa [#allocation3 + $0x1], 1 }
 0x15b   :  { %341 = vsyncpa [#allocation6], 1 }
 0x15c   :  { %342 = vsyncpa [#allocation4], 1 }
 0x15d   :  { %344 = vsyncpa [#allocation4 + $0x1], 1 }

</bundles_post_ra>
